<compile_context>
chip_gen: v7x
topology: tpu7x:2x2x1
jax: 0.10.0
libtpu: 0.0.40
codegen_flags: <defaults>
</compile_context>

<pallas_src>
import functools

import jax
import jax.numpy as jnp
from jax.experimental import pallas as pl
from jax.experimental.pallas import tpu as pltpu


def _fused_conv_kernel(negative_slope, Wo, TM, n_tiles, xs0_ref, xs1_ref, w_ref, o_ref):
    # xs{0,1}_ref: (1, Q, L) bf16, L = (Ho+1)*Wo, Q = 4*Cin, resident per batch
    # w_ref:       (2, 2, Cout, Q) bf16 (grid-invariant, resident)
    # o_ref:       (1, Cout, TM) out_dtype
    t = pl.program_id(1)

    acc = None
    for sel, xs_ref in enumerate((xs0_ref, xs1_ref)):
        if n_tiles == 1:
            # Single spatial tile: whole flat axis, purely static reads.
            slab = xs_ref[0]                                    # (Q, L)
        else:
            start = t * TM
            if TM % 128 == 0:                                   # true for all multi-tile picks
                start = pl.multiple_of(start, 128)
            slab = xs_ref[0, :, pl.ds(start, TM + Wo)]          # (Q, TM + Wo)
        for dh in range(2):
            op = slab[:, dh * Wo:dh * Wo + TM]                  # static lane slice, (Q, TM)
            d = jnp.dot(w_ref[dh, sel], op, preferred_element_type=jnp.float32)
            acc = d if acc is None else acc + d

    if negative_slope == 0.0:
        act = jnp.maximum(acc, 0.0)                             # ReLU
    else:
        act = jnp.where(acc >= 0.0, acc, negative_slope * acc)  # LeakyReLU
    o_ref[0] = act.astype(o_ref.dtype)


def _pick_row_tile(Ho, Wo, N):
    """Pick output-row tile TR (divisor of Ho).

    TM = TR*Wo must be a multiple of 128 or the full spatial extent (BlockSpec lane rule).
    Prefer TM around 8K-16K lanes (per-step overhead amortization) and >=4 total grid
    programs (v7x megacore / pipelining)."""
    divs = sorted((d for d in range(1, Ho + 1) if Ho % d == 0), reverse=True)
    legal = [d for d in divs if (d * Wo) % 128 == 0 or d == Ho]
    cands = [d for d in legal if d * Wo <= 16384] or [min(legal)]
    good = [d for d in cands if N * (Ho // d) >= 4 and d * Wo >= 1024]
    pool = good if good else cands
    return max(pool, key=lambda d: d * Wo)


@functools.partial(jax.jit, static_argnames=("activation", "out_dtype"))
def g_nonbatch_block_forward(x_nchw, weight, activation="ReLU", out_dtype=jnp.float32):
    """Forward of G_NonBatchBlock.

    x_nchw: [N, C_in, H, W] float32 (H, W even)
    weight: [C_out, C_in, 4, 4] float32 (PyTorch Conv2d OIHW layout)
    returns [N, C_out, H//2, W//2] in out_dtype (default f32; bf16 halves output HBM traffic)
    """
    N, Cin, H, W = x_nchw.shape
    Cout = weight.shape[0]
    assert weight.shape == (Cout, Cin, 4, 4), weight.shape
    assert H % 2 == 0 and W % 2 == 0, "stride-2 k=4 p=1 path assumes even H, W"

    Ho, Wo = H // 2, W // 2
    HoWo = Ho * Wo
    Q = 4 * Cin                 # contraction size per (dh, sel) group: (kh%2, kw%2, ci)
    L = (Ho + 1) * Wo           # flat length of each row-flattened phase tensor

    # Both the module's (misspelled) "LeakyRelU" and the standard spelling get LeakyReLU(0.2);
    # everything else is ReLU, matching the original nn.Sequential construction.
    leaky = activation in ("LeakyRelU", "LeakyReLU", "leakyrelu", "leaky_relu")
    negative_slope = 0.2 if leaky else 0.0

    # --- prep pass (one fused XLA pass over the small input; no 4x im2col expansion) ---
    # Reflect padding (pad=1 on H and W), matching padding_mode='reflect'.
    xp = jnp.pad(x_nchw, ((0, 0), (0, 0), (1, 1), (1, 1)), mode="reflect")  # [N,Cin,H+2,W+2]
    # 4-phase split: phases[n, ph*2+pw, ci, i, j] = xp[n, ci, 2i+ph, 2j+pw]
    phases = jnp.stack([xp[:, :, ph::2, pw::2] for ph in (0, 1) for pw in (0, 1)],
                       axis=1)                                   # [N, 4, Cin, Ho+1, Wo+1]
    # Column-shift variants (sel = kw//2), width Wo, rows flattened into the lane axis.
    xs0 = phases[..., :Wo].reshape(N, Q, L).astype(jnp.bfloat16)   # sel = 0
    xs1 = phases[..., 1:].reshape(N, Q, L).astype(jnp.bfloat16)    # sel = 1

    # Regrouped weights: wg[dh, sel, co, (ph, pw, ci)] = weight[co, ci, 2*dh+ph, 2*sel+pw]
    w6 = weight.reshape(Cout, Cin, 2, 2, 2, 2)                   # [co, ci, dh, ph, sel, pw]
    wg = jnp.transpose(w6, (2, 4, 0, 3, 5, 1)).reshape(2, 2, Cout, Q).astype(jnp.bfloat16)

    # --- tiling ---
    TR = _pick_row_tile(Ho, Wo, N)
    TM = TR * Wo
    n_tiles = Ho // TR
    grid = (N, n_tiles)

    kernel = functools.partial(_fused_conv_kernel, negative_slope, Wo, TM, n_tiles)

    out_bytes = jnp.dtype(out_dtype).itemsize
    out_flat = pl.pallas_call(
        kernel,
        out_shape=jax.ShapeDtypeStruct((N, Cout, HoWo), out_dtype),
        grid_spec=pltpu.PrefetchScalarGridSpec(
            num_scalar_prefetch=0,
            grid=grid,
            in_specs=[
                # Per-batch resident phase tensors (index_map invariant in the tile axis).
                pl.BlockSpec((1, Q, L), lambda n, t: (n, 0, 0)),
                pl.BlockSpec((1, Q, L), lambda n, t: (n, 0, 0)),
                # Grid-invariant ~1.5 KB weight block, stays in VMEM.
                pl.BlockSpec((2, 2, Cout, Q), lambda n, t: (0, 0, 0, 0)),
            ],
            out_specs=pl.BlockSpec((1, Cout, TM), lambda n, t: (n, 0, t)),
        ),
        compiler_params=pltpu.CompilerParams(
            dimension_semantics=("parallel", "parallel"),
            vmem_limit_bytes=48 * 1024 * 1024),
        cost_estimate=pl.CostEstimate(
            flops=2 * N * HoWo * (16 * Cin) * Cout,
            transcendentals=0,
            bytes_accessed=(2 * N * Q * L * 2 + 2 * 2 * Cout * Q * 2
                            + N * Cout * HoWo * out_bytes)),
    )(xs0, xs1, wg)

    # [N, Cout, Ho*Wo] -> [N, Cout, Ho, Wo]: contiguous reshape, no transpose/slice.
    return out_flat.reshape(N, Cout, Ho, Wo)


def _reference_forward(x_nchw, weight, negative_slope=0.0):
    """Pure-JAX f32 reference (lax conv) for validation."""
    xp = jnp.pad(x_nchw, ((0, 0), (0, 0), (1, 1), (1, 1)), mode="reflect")
    y = jax.lax.conv_general_dilated(
        xp, weight,
        window_strides=(2, 2),
        padding="VALID",
        dimension_numbers=("NCHW", "OIHW", "NCHW"),
    )
    if negative_slope:
        return jnp.where(y >= 0, y, negative_slope * y)
    return jnp.maximum(y, 0.0)


if __name__ == "__main__":
    # Module defaults: in_channels=3, out_channels=64; small batch/spatial test shapes.
    N, Cin, H, W = 2, 3, 16, 16
    Cout = 64

    key = jax.random.PRNGKey(0)
    kx, kw = jax.random.split(key)
    x = jax.random.normal(kx, (N, Cin, H, W), dtype=jnp.float32)
    fan_in = Cin * 4 * 4
    bound = 1.0 / jnp.sqrt(jnp.float32(fan_in))
    weight = jax.random.uniform(kw, (Cout, Cin, 4, 4), dtype=jnp.float32,
                                minval=-bound, maxval=bound)

    out = jax.block_until_ready(g_nonbatch_block_forward(x, weight))
    ref = jax.block_until_ready(_reference_forward(x, weight))

    assert out.shape == (N, Cout, H // 2, W // 2), out.shape
    # bf16 MXU inputs vs f32 reference -> relaxed tolerance.
    assert jnp.allclose(out, ref, atol=2e-2, rtol=2e-2), float(
        jnp.max(jnp.abs(out - ref)))

    # Also exercise the LeakyReLU path (both spellings select slope 0.2).
    out_l = jax.block_until_ready(
        g_nonbatch_block_forward(x, weight, activation="LeakyRelU"))
    ref_l = jax.block_until_ready(_reference_forward(x, weight, negative_slope=0.2))
    assert jnp.allclose(out_l, ref_l, atol=2e-2, rtol=2e-2), float(
        jnp.max(jnp.abs(out_l - ref_l)))

    print("KERNEL_OK")
</pallas_src>

<mosaic_0001>
module attributes {stable_mosaic.version = 11 : i64} {
  func.func @_fused_conv_kernel(%arg0: i32, %arg1: i32, %arg2: memref<1x12x72xbf16, #tpu.memory_space<vmem>>, %arg3: memref<1x12x72xbf16, #tpu.memory_space<vmem>>, %arg4: memref<2x2x64x12xbf16, #tpu.memory_space<vmem>>, %arg5: memref<1x64x64xf32, #tpu.memory_space<vmem>>) attributes {dimension_semantics = [#tpu.dimension_semantics<parallel>, #tpu.dimension_semantics<parallel>], iteration_bounds = array<i64: 2, 1>, scalar_prefetch = 0 : i64, scratch_operands = 0 : i64, tpu.core_type = #tpu.core_type<tc>, window_params = [{transform_indices = @transform_0, window_bounds = array<i64: 1, 12, 72>}, {transform_indices = @transform_1, window_bounds = array<i64: 1, 12, 72>}, {pipeline_mode = #tpu.pipeline_mode<synchronous>, transform_indices = @transform_2, window_bounds = array<i64: 2, 2, 64, 12>}, {transform_indices = @transform_3, window_bounds = array<i64: 1, 64, 64>}]} {
    %c0 = arith.constant 0 : index
    %c0_0 = arith.constant 0 : index
    %c0_1 = arith.constant 0 : index
    %0 = vector.load %arg2[%c0, %c0_0, %c0_1] : memref<1x12x72xbf16, #tpu.memory_space<vmem>>, vector<1x12x72xbf16>
    %1 = vector.shape_cast %0 : vector<1x12x72xbf16> to vector<12x72xbf16>
    %2 = vector.extract_strided_slice %1 {offsets = [0, 0], sizes = [12, 64], strides = [1, 1]} : vector<12x72xbf16> to vector<12x64xbf16>
    %c0_2 = arith.constant 0 : index
    %c0_3 = arith.constant 0 : index
    %c0_4 = arith.constant 0 : index
    %c0_5 = arith.constant 0 : index
    %3 = vector.load %arg4[%c0_2, %c0_3, %c0_4, %c0_5] : memref<2x2x64x12xbf16, #tpu.memory_space<vmem>>, vector<1x1x64x12xbf16>
    %4 = vector.shape_cast %3 : vector<1x1x64x12xbf16> to vector<64x12xbf16>
    %cst = arith.constant dense<0.000000e+00> : vector<64x64xf32>
    %5 = tpu.matmul %4, %2, %cst {dimension_numbers = #tpu.dot_dimension_numbers<[1], [0], [0], [1], [0, 0, 1, 1], [], []>} : vector<64x12xbf16>, vector<12x64xbf16>, vector<64x64xf32> -> vector<64x64xf32>
    %6 = vector.extract_strided_slice %1 {offsets = [0, 8], sizes = [12, 64], strides = [1, 1]} : vector<12x72xbf16> to vector<12x64xbf16>
    %c1 = arith.constant 1 : index
    %c0_6 = arith.constant 0 : index
    %c0_7 = arith.constant 0 : index
    %c0_8 = arith.constant 0 : index
    %7 = vector.load %arg4[%c1, %c0_6, %c0_7, %c0_8] : memref<2x2x64x12xbf16, #tpu.memory_space<vmem>>, vector<1x1x64x12xbf16>
    %8 = vector.shape_cast %7 : vector<1x1x64x12xbf16> to vector<64x12xbf16>
    %cst_9 = arith.constant dense<0.000000e+00> : vector<64x64xf32>
    %9 = tpu.matmul %8, %6, %cst_9 {dimension_numbers = #tpu.dot_dimension_numbers<[1], [0], [0], [1], [0, 0, 1, 1], [], []>} : vector<64x12xbf16>, vector<12x64xbf16>, vector<64x64xf32> -> vector<64x64xf32>
    %10 = arith.addf %5, %9 : vector<64x64xf32>
    %c0_10 = arith.constant 0 : index
    %c0_11 = arith.constant 0 : index
    %c0_12 = arith.constant 0 : index
    %11 = vector.load %arg3[%c0_10, %c0_11, %c0_12] : memref<1x12x72xbf16, #tpu.memory_space<vmem>>, vector<1x12x72xbf16>
    %12 = vector.shape_cast %11 : vector<1x12x72xbf16> to vector<12x72xbf16>
    %13 = vector.extract_strided_slice %12 {offsets = [0, 0], sizes = [12, 64], strides = [1, 1]} : vector<12x72xbf16> to vector<12x64xbf16>
    %c0_13 = arith.constant 0 : index
    %c1_14 = arith.constant 1 : index
    %c0_15 = arith.constant 0 : index
    %c0_16 = arith.constant 0 : index
    %14 = vector.load %arg4[%c0_13, %c1_14, %c0_15, %c0_16] : memref<2x2x64x12xbf16, #tpu.memory_space<vmem>>, vector<1x1x64x12xbf16>
    %15 = vector.shape_cast %14 : vector<1x1x64x12xbf16> to vector<64x12xbf16>
    %cst_17 = arith.constant dense<0.000000e+00> : vector<64x64xf32>
    %16 = tpu.matmul %15, %13, %cst_17 {dimension_numbers = #tpu.dot_dimension_numbers<[1], [0], [0], [1], [0, 0, 1, 1], [], []>} : vector<64x12xbf16>, vector<12x64xbf16>, vector<64x64xf32> -> vector<64x64xf32>
    %17 = arith.addf %10, %16 : vector<64x64xf32>
    %18 = vector.extract_strided_slice %12 {offsets = [0, 8], sizes = [12, 64], strides = [1, 1]} : vector<12x72xbf16> to vector<12x64xbf16>
    %c1_18 = arith.constant 1 : index
    %c1_19 = arith.constant 1 : index
    %c0_20 = arith.constant 0 : index
    %c0_21 = arith.constant 0 : index
    %19 = vector.load %arg4[%c1_18, %c1_19, %c0_20, %c0_21] : memref<2x2x64x12xbf16, #tpu.memory_space<vmem>>, vector<1x1x64x12xbf16>
    %20 = vector.shape_cast %19 : vector<1x1x64x12xbf16> to vector<64x12xbf16>
    %cst_22 = arith.constant dense<0.000000e+00> : vector<64x64xf32>
    %21 = tpu.matmul %20, %18, %cst_22 {dimension_numbers = #tpu.dot_dimension_numbers<[1], [0], [0], [1], [0, 0, 1, 1], [], []>} : vector<64x12xbf16>, vector<12x64xbf16>, vector<64x64xf32> -> vector<64x64xf32>
    %22 = arith.addf %17, %21 : vector<64x64xf32>
    %cst_23 = arith.constant 0.000000e+00 : f32
    %23 = vector.broadcast %cst_23 : f32 to vector<64x64xf32>
    %24 = arith.maximumf %22, %23 : vector<64x64xf32>
    %c0_24 = arith.constant 0 : index
    %c0_25 = arith.constant 0 : index
    %c0_26 = arith.constant 0 : index
    %25 = vector.load %arg5[%c0_24, %c0_25, %c0_26] : memref<1x64x64xf32, #tpu.memory_space<vmem>>, vector<1x64x64xf32>
    %26 = vector.shape_cast %25 : vector<1x64x64xf32> to vector<64x64xf32>
    %27 = vector.shape_cast %24 : vector<64x64xf32> to vector<1x64x64xf32>
    tpu.vector_store %arg5[%c0_24, %c0_25, %c0_26], %27 {strides = array<i32>} : memref<1x64x64xf32, #tpu.memory_space<vmem>>, vector<1x64x64xf32>,
    return
  }
  func.func @transform_0(%arg0: i32, %arg1: i32) -> (i32, i32, i32) {
    %c0_i32 = arith.constant 0 : i32
    %c0_i32_0 = arith.constant 0 : i32
    %c0_i32_1 = arith.constant 0 : i32
    return %arg0, %c0_i32, %c0_i32_0 : i32, i32, i32
  }
  func.func @transform_1(%arg0: i32, %arg1: i32) -> (i32, i32, i32) {
    %c0_i32 = arith.constant 0 : i32
    %c0_i32_0 = arith.constant 0 : i32
    %c0_i32_1 = arith.constant 0 : i32
    return %arg0, %c0_i32, %c0_i32_0 : i32, i32, i32
  }
  func.func @transform_2(%arg0: i32, %arg1: i32) -> (i32, i32, i32, i32) {
    %c0_i32 = arith.constant 0 : i32
    %c0_i32_0 = arith.constant 0 : i32
    %c0_i32_1 = arith.constant 0 : i32
    %c0_i32_2 = arith.constant 0 : i32
    %c0_i32_3 = arith.constant 0 : i32
    return %c0_i32, %c0_i32_0, %c0_i32_1, %c0_i32_2 : i32, i32, i32, i32
  }
  func.func @transform_3(%arg0: i32, %arg1: i32) -> (i32, i32, i32) {
    %c0_i32 = arith.constant 0 : i32
    %c0_i32_0 = arith.constant 0 : i32
    return %arg0, %c0_i32, %arg1 : i32, i32, i32
  }
}

</mosaic_0001>

<bundles_post_ra>
// kernel: g_nonbatch_block_forward.1
= control target key start
LH: loop header
LB: loop body
LE: loop exit
PB: predicated region body
PF: predicated region fallthrough
CT: control target
= control target key end

     0   :  { %s1039_s12 = smov 0   ;;  %s1041_s13 = smov 0   ;;  %s1159_s0 = inlined_call_operand.vmem [shape: bf16[2,12,72], index: 0, kind: input, shape index: {}]   ;;  %s1160_s1 = inlined_call_operand.vmem [shape: bf16[2,12,72], index: 1, kind: input, shape index: {}]   ;;  %s1161_s2 = inlined_call_operand.vmem [shape: bf16[2,2,64,12], index: 2, kind: input, shape index: {}]   ;;  %s1162_s3 = inlined_call_operand.vmem [shape: f32[2,64,64], index: 3, kind: output, shape index: {}]  }
   0x1   :  { %s1043_s14 = smov 0  }
   0x2 LB: > { %s25_s15 = sadd.s32 1, %s1012_s13  ;;  %p793_p0 = scmp.ge.s32.totalorder %s1016_s14, 1  ;;  %s1016_s14 = sphi %s1043_s14, %s13_s14   ;;  %s1012_s13 = sphi %s1041_s13, %s1164_s13   ;;  %s1008_s12 = sphi %s1039_s12, %s1163_s12  }
   0x3   : > { %p27_p1 = scmp.ge.s32.totalorder %s25_s15, 2  ;;  %p161_p2 = scmp.lt.s32.totalorder %s1016_s14, 3 }
   0x5   : > { %s1166_s15 = smov (%p27_p1, %s25_s15), 0  ;;  %p162_p3 = pnand %p793_p0, %p161_p2 }
   0x6   : > { %p193_p4 = scmp.lt.s32.totalorder (!%p162_p3), %s1008_s12, 1  ;;  %vm258_vm0 = vcmask (!%p162_p3), 97280   ;;  %v978_v0 = vld [vmem:[%s1161_s2 + $0x20] sm:$0xff] (!%p162_p3)   ;;  %vm271_vm1 = vcmask (!%p162_p3), 1045504   ;;  %s1018_s27 = smov (!%p162_p3), 120   ;;  %v979_v5 = vld [vmem:[%s1161_s2 + $0x28] sm:$0xff] (!%p162_p3)  }
   0x7   : > { %165 = sbr.rel (%p162_p3) target bundleno = 381 (0x17d), region = 32  ;;  %905 = vmatprep.mubr.msk.bf16.mxu0 (!%p162_p3), %vm258_vm0, %v978_v0  ;;  %v982_v1 = vld [vmem:[%s1161_s2 + $0x40] sm:$0xff] (!%p162_p3)   ;;  %v980_v6 = vld [vmem:[%s1161_s2 + $0x30] sm:$0xff] (!%p162_p3)   ;;  %v981_v7 = vld [vmem:[%s1161_s2 + $0x38] sm:$0xff] (!%p162_p3)   ;;  %vm691_vm2 = vcmask (!%p162_p3), 523264  }
   0x8   : > { %885 = vmatprep.mubr.msk.bf16.mxu1 (!%p162_p3), %vm258_vm0, %v982_v1  ;;  %v984_v8 = vld [vmem:[%s1161_s2 + $0x60] sm:$0xff] (!%p162_p3)   ;;  %v983_v11 = vld [vmem:[%s1161_s2 + $0x48] sm:$0xff] (!%p162_p3)   ;;  %v986_v13 = vld [vmem:[%s1161_s2 + $0x50] sm:$0xff] (!%p162_p3)  }
   0x9   : > { %v985_v16 = vld [vmem:[%s1161_s2 + $0x68] sm:$0xff] (!%p162_p3)   ;;  %v988_v17 = vld [vmem:[%s1161_s2 + $0x70] sm:$0xff] (!%p162_p3)   ;;  %v987_v18 = vld [vmem:[%s1161_s2 + $0x58] sm:$0xff] (!%p162_p3)  }
   0xa   : > { %v990_v19 = vld [vmem:[%s1161_s2] sm:$0xff] (!%p162_p3)   ;;  %v989_v20 = vld [vmem:[%s1161_s2 + $0x78] sm:$0xff] (!%p162_p3)   ;;  %v991_v21 = vld [vmem:[%s1161_s2 + $0x8] sm:$0xff] (!%p162_p3)  }
   0xb   : > { %v992_v22 = vld [vmem:[%s1161_s2 + $0x10] sm:$0xff] (!%p162_p3)   ;;  %v993_v23 = vld [vmem:[%s1161_s2 + $0x18] sm:$0xff] (!%p162_p3)  }
   0xe   : > { %s1168_s12 = smov (!%p193_p4, %s1008_s12), 1 }
   0xf   : > { %s860_s18 = sshll.u32 %s1168_s12, 3  ;;  %s862_s6 = sshll.u32 %s1168_s12, 6 }
  0x10   : > { %s197_s23 = scalar_lea.vmem %s1159_s0, %s860_s18  ;;  %s202_s26 = scalar_lea.vmem %s1160_s1, %s860_s18 }
  0x11   : > { %v976_v2 = vld [vmem:[%s197_s23] sm:$0x3f]   ;;  %s210_s9 = scalar_lea.vmem %s1162_s3, %s862_s6 }
  0x12   : > { %v977_v3 = vld [vmem:[%s202_s26] sm:$0x3f]   ;;  %256 = vrot.lane.b32.xlu0 %v976_v2, %s1018_s27  ;;  %v373_v12 = vsel %vm271_vm1, %v976_v2, 0 }
  0x13   : > { %949 = vmatprep.subr.msk.bf16.mxu0 %vm271_vm1, %v977_v3  ;;  %v489_v4 = vsel %vm271_vm1, %v977_v3, 0 }
  0x14   : > { %904 = vmatpush3.bf16.msra.mxu0 %v489_v4 }
  0x16   : > { %593 = vrot.lane.b32.xlu0 %v977_v3, %s1018_s27 }
  0x17   : > { %906 = vmatmul.mubr.msk.bf16.vlgmr.msra.gmra.mrb[0].mxu0 %vm258_vm0, %v979_v5 }
  0x18   : > { %909 = vmatprep.mubr.msk.bf16.mxu0 %vm258_vm0, %v980_v6 }
  0x1f   : > { %910 = vmatmul.mubr.msk.bf16.gmra.mrb[4].mxu0 %vm258_vm0, %v981_v7 }
  0x20   : > { %915 = vmatprep.mubr.msk.bf16.mxu0 %vm258_vm0, %v984_v8 }
  0x84   : > { %v257_v9 = vpop.permute.xlu0 %256 }
  0x85   : > { %947 = vmatprep.subr.msk.bf16.mxu1 %vm271_vm1, %v257_v9  ;;  %v273_v10 = vsel %vm271_vm1, %v257_v9, 0 }
  0x86   : > { %884 = vmatpush3.bf16.msra.mxu1 %v273_v10 }
  0x87   : > { %948 = vmatprep.subr.msk.bf16.mxu1 %vm271_vm1, %v976_v2 }
  0x88   : > { %v594_v14 = vpop.permute.xlu0 %593 }
  0x89   : > { %v608_v15 = vsel %vm271_vm1, %v594_v14, 0  ;;  %886 = vmatmul.mubr.msk.bf16.vlgmr.msra.gmra.mrb[0].mxu1 %vm258_vm0, %v983_v11  ;;  %950 = vmatprep.subr.msk.bf16.mxu0 %vm271_vm1, %v594_v14 }
  0x8a   : > { %894 = vmatpush3.bf16.msra.mxu1 %v373_v12  ;;  %914 = vmatpush3.bf16.msra.mxu0 %v608_v15 }
  0x8b   : > { %889 = vmatprep.mubr.msk.bf16.mxu1 %vm258_vm0, %v986_v13 }
  0x8d   : > { %916 = vmatmul.mubr.msk.bf16.vlgmr.msra.gmra.mrb[0].mxu0 %vm258_vm0, %v985_v16 }
  0x8e   : > { %919 = vmatprep.mubr.msk.bf16.mxu0 %vm258_vm0, %v988_v17 }
  0x91   : > { %890 = vmatmul.mubr.msk.bf16.gmra.mrb[4].mxu1 %vm258_vm0, %v987_v18 }
  0x92   : > { %895 = vmatprep.mubr.msk.bf16.mxu1 %vm258_vm0, %v990_v19 }
  0x95   : > { %920 = vmatmul.mubr.msk.bf16.gmra.mrb[4].mxu0 %vm258_vm0, %v989_v20 }
  0x99   : > { %896 = vmatmul.mubr.msk.bf16.vlgmr.msra.gmra.mrb[0].mxu1 %vm258_vm0, %v991_v21 }
  0x9a   : > { %899 = vmatprep.mubr.msk.bf16.mxu1 %vm258_vm0, %v992_v22 }
  0xa1   : > { %900 = vmatmul.mubr.msk.bf16.gmra.mrb[4].mxu1 %vm258_vm0, %v993_v23 }
 0x160   : > { %v917_v24 = vpop.f32.mrb[0].mxu0 }
 0x161   : > { %v644_v25 = vpop.f32.mrb[1].mxu0 }
 0x162   : > { %v918_v26 = vpop.f32.mrb[2].mxu0 }
 0x163   : > { %v647_v27 = vpop.f32.mrb[3].mxu0 }
 0x168   : > { %v921_v28 = vpop.f32.mrb[4].mxu0 }
 0x169   : > { %v660_v29 = vpop.f32.mrb[5].mxu0 }
 0x16a   : > { %v922_v30 = vpop.f32.mrb[6].mxu0 }
 0x16b   : > { %v663_v31 = vpop.f32.mrb[7].mxu0 }
 0x16c   : > { %v897_v32 = vpop.f32.mrb[0].mxu1 }
 0x16d   : > { %v923_v33 = vadd.f32 %v917_v24, %v897_v32  ;;  %v409_v34 = vpop.f32.mrb[1].mxu1 }
 0x16e   : > { %v924_v35 = vadd.f32 %v644_v25, %v409_v34  ;;  %v898_v36 = vpop.f32.mrb[2].mxu1 }
 0x16f   : > { %v685_v37 = vmax.f32 %v923_v33, 0.0  ;;  %v925_v38 = vadd.f32 %v918_v26, %v898_v36  ;;  %v412_v39 = vpop.f32.mrb[3].mxu1 }
 0x170   : > { %v683_v40 = vmax.f32 %v924_v35, 0.0  ;;  %v926_v41 = vadd.f32 %v647_v27, %v412_v39 }
 0x171   : > { %694 = vst.msk [vmem:[%s210_s9 + $0x10] sm:$0xff] %vm691_vm2, %v685_v37  ;;  %v686_v42 = vmax.f32 %v925_v38, 0.0 }
 0x172   : > { %692 = vst.msk [vmem:[%s210_s9] sm:$0xff] %vm691_vm2, %v683_v40  ;;  %v684_v43 = vmax.f32 %v926_v41, 0.0 }
 0x173   : > { %695 = vst.msk [vmem:[%s210_s9 + $0x18] sm:$0xff] %vm691_vm2, %v686_v42 }
 0x174   : > { %693 = vst.msk [vmem:[%s210_s9 + $0x8] sm:$0xff] %vm691_vm2, %v684_v43  ;;  %v901_v44 = vpop.f32.mrb[4].mxu1 }
 0x175   : > { %v927_v45 = vadd.f32 %v921_v28, %v901_v44  ;;  %v425_v46 = vpop.f32.mrb[5].mxu1 }
 0x176   : > { %v928_v47 = vadd.f32 %v660_v29, %v425_v46  ;;  %v902_v48 = vpop.f32.mrb[6].mxu1 }
 0x177   : > { %v689_v49 = vmax.f32 %v927_v45, 0.0  ;;  %v929_v50 = vadd.f32 %v922_v30, %v902_v48  ;;  %v428_v51 = vpop.f32.mrb[7].mxu1 }
 0x178   : > { %v687_v52 = vmax.f32 %v928_v47, 0.0  ;;  %v930_v53 = vadd.f32 %v663_v31, %v428_v51 }
 0x179   : > { %698 = vst.msk [vmem:[%s210_s9 + $0x30] sm:$0xff] %vm691_vm2, %v689_v49  ;;  %v690_v54 = vmax.f32 %v929_v50, 0.0 }
 0x17a   : > { %696 = vst.msk [vmem:[%s210_s9 + $0x20] sm:$0xff] %vm691_vm2, %v687_v52  ;;  %v688_v55 = vmax.f32 %v930_v53, 0.0 }
 0x17b   : > { %699 = vst.msk [vmem:[%s210_s9 + $0x38] sm:$0xff] %vm691_vm2, %v690_v54 }
 0x17c   : > { %697 = vst.msk [vmem:[%s210_s9 + $0x28] sm:$0xff] %vm691_vm2, %v688_v55 }
 0x17d PF: > { %s13_s14 = sadd.s32 1, %s1016_s14   ;;  %s1163_s12 = smov %s1012_s13 }
 0x17e   : > { %p10_p5 = scmp.ge.s32.totalorder %s13_s14, 4   ;;  %s1164_s13 = smov %s1166_s15 }
 0x180   :  { %12 = sbr.rel (!%p10_p5) target bundleno = 2 (0x2), region = 68 }

</bundles_post_ra>
